<compile_context>
chip_gen: v6e
topology: v6e:2x2x1
jax: 0.10.0
libtpu: 0.0.40
codegen_flags: <defaults>
</compile_context>

<pallas_src>
import jax
import jax.numpy as jnp
import numpy as np
from jax.experimental import pallas as pl
from jax.experimental.pallas import tpu as pltpu


# ----------------------------------------------------------------------------
# Kernel: out[i-tile] = dinv_dst[i-tile] * sum_k A_hat[i-tile, k-tile] @ xw[k-tile]
# ----------------------------------------------------------------------------
def gcn_agg_kernel(a_ref, xw_ref, dinv_ref, o_ref, acc_ref):
    k = pl.program_id(1)

    @pl.when(k == 0)
    def _init():
        acc_ref[...] = jnp.zeros_like(acc_ref)

    # A tile arrives as bf16 (halved HBM bytes); values are exact small
    # integers, so the fp32 upcast + fp32 matmul is numerically exact.
    a_tile = a_ref[...].astype(jnp.float32)
    acc_ref[...] += jnp.dot(a_tile, xw_ref[...],
                            preferred_element_type=jnp.float32)

    @pl.when(k == pl.num_programs(1) - 1)
    def _finalize():
        # Destination-side D^{-1/2} row scaling, fused into the writeback.
        o_ref[...] = (acc_ref[...] * dinv_ref[...]).astype(o_ref.dtype)


def _round_up(x, m):
    return (x + m - 1) // m * m


def gcn_aggregate(a_hat, xw_src_scaled, dinv, *, tile=512):
    """Compute diag(dinv) @ A_hat @ xw_src_scaled with a tiled Pallas kernel.

    a_hat:          (N, N)   unnormalized adjacency incl. self loops (fp32)
    xw_src_scaled:  (N, out_d) = diag(dinv) @ X @ W^T  (fp32)
    dinv:           (N,)     D^{-1/2}
    returns:        (N, out_d) fp32
    """
    N = a_hat.shape[0]
    out_d = xw_src_scaled.shape[1]

    # Tile / padding selection (last dim of A blocks must be lane-aligned).
    if N >= tile:
        tm = tk = tile
        Np = _round_up(N, tile)
    else:
        Np = _round_up(max(N, 8), 128)
        tm = tk = Np
    P = _round_up(out_d, 128)  # lane-dense output columns

    # Zero-pad operands (zero rows/cols contribute nothing to the sums).
    a_p = jnp.zeros((Np, Np), jnp.bfloat16).at[:N, :N].set(
        a_hat.astype(jnp.bfloat16))
    xw_p = jnp.zeros((Np, P), jnp.float32).at[:N, :out_d].set(
        xw_src_scaled.astype(jnp.float32))
    dinv_p = jnp.zeros((Np, 1), jnp.float32).at[:N, 0].set(
        dinv.astype(jnp.float32))

    grid = (Np // tm, Np // tk)

    cost = pl.CostEstimate(
        flops=2 * Np * Np * P,
        bytes_accessed=(Np * Np * 2                 # bf16 adjacency stream
                        + grid[0] * Np * P * 4      # xw re-read per row tile
                        + Np * P * 4                # output writeback
                        + Np * 4),                  # dinv
        transcendentals=0,
    )

    out_p = pl.pallas_call(
        gcn_agg_kernel,
        out_shape=jax.ShapeDtypeStruct((Np, P), jnp.float32),
        grid_spec=pltpu.PrefetchScalarGridSpec(
            num_scalar_prefetch=0,
            grid=grid,
            in_specs=[
                pl.BlockSpec((tm, tk), lambda i, k: (i, k)),   # A_hat tile
                pl.BlockSpec((tk, P), lambda i, k: (k, 0)),    # xw tile
                pl.BlockSpec((tm, 1), lambda i, k: (i, 0)),    # dinv rows
            ],
            out_specs=pl.BlockSpec((tm, P), lambda i, k: (i, 0)),
            scratch_shapes=[pltpu.VMEM((tm, P), jnp.float32)],  # fp32 accumulator
        ),
        compiler_params=pltpu.CompilerParams(
            dimension_semantics=("parallel", "arbitrary"),
            vmem_limit_bytes=32 * 1024 * 1024,
        ),
        cost_estimate=cost,
    )(a_p, xw_p, dinv_p)

    return out_p[:N, :out_d]


# ----------------------------------------------------------------------------
# Graph preprocessing (plain JAX glue) — matches torch_geometric gcn_norm:
# scatter-add edges (duplicates counted), add_remaining_self_loops (existing
# self-loops kept, not double-counted), symmetric degree normalization.
# ----------------------------------------------------------------------------
def build_adjacency_and_dinv(edge_index, num_nodes):
    src, dst = edge_index
    a = jnp.zeros((num_nodes, num_nodes), jnp.float32)
    a = a.at[dst, src].add(1.0)                       # A_hat[t, s] += 1 per edge s -> t
    diag = jnp.diagonal(a)
    idx = jnp.arange(num_nodes)
    a = a.at[idx, idx].set(jnp.where(diag > 0, diag, 1.0))   # add *remaining* self loops
    deg = a.sum(axis=1)
    dinv = jnp.where(deg > 0, 1.0 / jnp.sqrt(deg), 0.0)
    return a, dinv


def model_gcn_forward(x, edge_index, w):
    """Model_GCN.forward (train=True path): conv1(x, edge_index).squeeze(-1)."""
    out_d = w.shape[0]
    a_hat, dinv = build_adjacency_and_dinv(edge_index, x.shape[0])
    xw = x @ w.T                       # (N, out_d) — tiny, stays in XLA
    xw_scaled = xw * dinv[:, None]     # source-side D^{-1/2}
    out = gcn_aggregate(a_hat, xw_scaled, dinv)
    # torch .squeeze(-1): only squeezes when the trailing dim is 1
    return jnp.squeeze(out, -1) if out_d == 1 else out


# ----------------------------------------------------------------------------
# Reference (float64 numpy) of the GCNConv semantics for verification.
# ----------------------------------------------------------------------------
def reference_forward(x, edge_index, w):
    a_hat, dinv = build_adjacency_and_dinv(edge_index, x.shape[0])
    a = np.asarray(a_hat, np.float64)
    dv = np.asarray(dinv, np.float64)
    a_norm = dv[:, None] * a * dv[None, :]
    out = a_norm @ (np.asarray(x, np.float64) @ np.asarray(w, np.float64).T)
    return np.squeeze(out, -1) if w.shape[0] == 1 else out


if __name__ == "__main__":
    key = jax.random.PRNGKey(0)

    # --- small case (matches the node-regression GCN: squeeze(-1) => out_d==1) ---
    N, d, out_d = 16, 8, 1
    kx, kw, ke1, ke2, kx2 = jax.random.split(key, 5)
    x = jax.random.normal(kx, (N, d), jnp.float32)

    limit = float(np.sqrt(6.0 / (d + out_d)))  # glorot-style GCNConv weight (out_d, d)
    w = jax.random.uniform(kw, (out_d, d), jnp.float32, -limit, limit)

    # deterministic graph: node i -> i+1 and i+2 (mod N); no self-loops
    src = jnp.concatenate([jnp.arange(N), jnp.arange(N)])
    dst = jnp.concatenate([(jnp.arange(N) + 1) % N, (jnp.arange(N) + 2) % N])
    edge_index = jnp.stack([src, dst]).astype(jnp.int32)

    out = jax.block_until_ready(model_gcn_forward(x, edge_index, w))
    ref = reference_forward(x, edge_index, w)
    assert out.shape == (N,)
    np.testing.assert_allclose(np.asarray(out), ref, rtol=1e-4, atol=1e-5)

    # --- larger case: exercises padding, multi-tile grid and K accumulation ---
    N2 = 600
    x2 = jax.random.normal(kx2, (N2, d), jnp.float32)
    src2 = jax.random.randint(ke1, (2 * N2,), 0, N2, jnp.int32)
    dst2 = jax.random.randint(ke2, (2 * N2,), 0, N2, jnp.int32)
    edge_index2 = jnp.stack([src2, dst2]).astype(jnp.int32)

    out2 = jax.block_until_ready(model_gcn_forward(x2, edge_index2, w))
    ref2 = reference_forward(x2, edge_index2, w)
    assert out2.shape == (N2,)
    np.testing.assert_allclose(np.asarray(out2), ref2, rtol=1e-4, atol=1e-5)

    # TODO(synk): the dense N x N adjacency keeps the whole approach O(N^2)
    # memory; a sparse/gather formulation would be needed for very large graphs.
    print("KERNEL_OK")
</pallas_src>

<mosaic_0001>
module attributes {stable_mosaic.version = 11 : i64} {
  func.func @gcn_agg_kernel(%arg0: i32, %arg1: i32, %arg2: memref<128x128xbf16, #tpu.memory_space<vmem>>, %arg3: memref<128x128xf32, #tpu.memory_space<vmem>>, %arg4: memref<128x1xf32, #tpu.memory_space<vmem>>, %arg5: memref<128x128xf32, #tpu.memory_space<vmem>>, %arg6: memref<128x128xf32, #tpu.memory_space<vmem>>) attributes {dimension_semantics = [#tpu.dimension_semantics<parallel>, #tpu.dimension_semantics<arbitrary>], iteration_bounds = array<i64: 1, 1>, scalar_prefetch = 0 : i64, scratch_operands = 1 : i64, tpu.core_type = #tpu.core_type<tc>, window_params = [{transform_indices = @transform_0, window_bounds = array<i64: 128, 128>}, {transform_indices = @transform_1, window_bounds = array<i64: 128, 128>}, {transform_indices = @transform_2, window_bounds = array<i64: 128, 1>}, {transform_indices = @transform_3, window_bounds = array<i64: 128, 128>}]} {
    %c0_i32 = arith.constant 0 : i32
    %0 = arith.cmpi eq, %arg1, %c0_i32 : i32
    %1 = arith.extui %0 : i1 to i32
    %c0_i32_0 = arith.constant 0 : i32
    %2 = arith.cmpi ne, %1, %c0_i32_0 : i32
    scf.if %2 {
      %cst_10 = arith.constant 0.000000e+00 : f32
      %13 = vector.broadcast %cst_10 : f32 to vector<128x128xf32>
      %c0_11 = arith.constant 0 : index
      %c0_12 = arith.constant 0 : index
      %14 = vector.load %arg6[%c0_11, %c0_12] : memref<128x128xf32, #tpu.memory_space<vmem>>, vector<128x128xf32>
      tpu.vector_store %arg6[%c0_11, %c0_12], %13 {strides = array<i32>} : memref<128x128xf32, #tpu.memory_space<vmem>>, vector<128x128xf32>,
    } else {
    }
    %c0 = arith.constant 0 : index
    %c0_1 = arith.constant 0 : index
    %3 = vector.load %arg2[%c0, %c0_1] : memref<128x128xbf16, #tpu.memory_space<vmem>>, vector<128x128xbf16>
    %4 = arith.extf %3 : vector<128x128xbf16> to vector<128x128xf32>
    %c0_2 = arith.constant 0 : index
    %c0_3 = arith.constant 0 : index
    %5 = vector.load %arg6[%c0_2, %c0_3] : memref<128x128xf32, #tpu.memory_space<vmem>>, vector<128x128xf32>
    %c0_4 = arith.constant 0 : index
    %c0_5 = arith.constant 0 : index
    %6 = vector.load %arg3[%c0_4, %c0_5] : memref<128x128xf32, #tpu.memory_space<vmem>>, vector<128x128xf32>
    %cst = arith.constant dense<0.000000e+00> : vector<128x128xf32>
    %7 = tpu.matmul %4, %6, %cst {dimension_numbers = #tpu.dot_dimension_numbers<[1], [0], [0], [1], [0, 0, 1, 1], [], []>} : vector<128x128xf32>, vector<128x128xf32>, vector<128x128xf32> -> vector<128x128xf32>
    %8 = arith.addf %5, %7 : vector<128x128xf32>
    %c0_6 = arith.constant 0 : index
    %c0_7 = arith.constant 0 : index
    %9 = vector.load %arg6[%c0_6, %c0_7] : memref<128x128xf32, #tpu.memory_space<vmem>>, vector<128x128xf32>
    tpu.vector_store %arg6[%c0_6, %c0_7], %8 {strides = array<i32>} : memref<128x128xf32, #tpu.memory_space<vmem>>, vector<128x128xf32>,
    %c0_i32_8 = arith.constant 0 : i32
    %10 = arith.cmpi eq, %arg1, %c0_i32_8 : i32
    %11 = arith.extui %10 : i1 to i32
    %c0_i32_9 = arith.constant 0 : i32
    %12 = arith.cmpi ne, %11, %c0_i32_9 : i32
    scf.if %12 {
      %c0_10 = arith.constant 0 : index
      %c0_11 = arith.constant 0 : index
      %13 = vector.load %arg6[%c0_10, %c0_11] : memref<128x128xf32, #tpu.memory_space<vmem>>, vector<128x128xf32>
      %c0_12 = arith.constant 0 : index
      %c0_13 = arith.constant 0 : index
      %14 = vector.load %arg4[%c0_12, %c0_13] : memref<128x1xf32, #tpu.memory_space<vmem>>, vector<128x1xf32>
      %15 = vector.broadcast %14 : vector<128x1xf32> to vector<128x128xf32>
      %16 = arith.mulf %13, %15 : vector<128x128xf32>
      %c0_14 = arith.constant 0 : index
      %c0_15 = arith.constant 0 : index
      %17 = vector.load %arg5[%c0_14, %c0_15] : memref<128x128xf32, #tpu.memory_space<vmem>>, vector<128x128xf32>
      tpu.vector_store %arg5[%c0_14, %c0_15], %16 {strides = array<i32>} : memref<128x128xf32, #tpu.memory_space<vmem>>, vector<128x128xf32>,
    } else {
    }
    return
  }
  func.func @transform_0(%arg0: i32, %arg1: i32) -> (i32, i32) {
    %c0_i32 = arith.constant 0 : i32
    return %arg0, %arg1 : i32, i32
  }
  func.func @transform_1(%arg0: i32, %arg1: i32) -> (i32, i32) {
    %c0_i32 = arith.constant 0 : i32
    %c0_i32_0 = arith.constant 0 : i32
    return %arg1, %c0_i32 : i32, i32
  }
  func.func @transform_2(%arg0: i32, %arg1: i32) -> (i32, i32) {
    %c0_i32 = arith.constant 0 : i32
    %c0_i32_0 = arith.constant 0 : i32
    return %arg0, %c0_i32 : i32, i32
  }
  func.func @transform_3(%arg0: i32, %arg1: i32) -> (i32, i32) {
    %c0_i32 = arith.constant 0 : i32
    %c0_i32_0 = arith.constant 0 : i32
    return %arg0, %c0_i32 : i32, i32
  }
}

</mosaic_0001>

<bundles_post_ra>
// kernel: tpu_custom_call.1
= control target key start
LH: loop header
LB: loop body
LE: loop exit
PB: predicated region body
PF: predicated region fallthrough
CT: control target
= control target key end

     0   :  { %8 = vsyncpa [#allocation4], 0  ;;  %s795_s0 = inlined_call_operand.hbm [shape: bf16[128,128], index: 0, kind: input, shape index: {}]   ;;  %s796_s1 = inlined_call_operand.vmem [shape: f32[128,128], index: 1, kind: input, shape index: {}]   ;;  %s797_s2 = inlined_call_operand.vmem [shape: f32[128,1], index: 2, kind: input, shape index: {}]   ;;  %s798_s3 = inlined_call_operand.hbm [shape: f32[128,128], index: 3, kind: output, shape index: {}]  }
   0x1   :  { %9 = vsyncpa [#allocation5], 0  ;;  %s666_s12 = smov [#allocation3]  }
   0x2   :  { %s15_s13 = sshll.u32 %s666_s12, 4  ;;  %s16_s13 = int_to_ptr.vmem [resolvable:$true] %s15_s13 }
   0x3   :  { %s630_s14 = scalar_lea.vmem %s16_s13, 1024  ;;  %p635_p1 = scmp.lt.s32.totalorder %s16_s13, %s16_s13 }
   0x4   :  { %p631_p0 = scmp.ne.s32.totalorder %s16_s13, %s630_s14  ;;  %p636_p2 = scmp.lt.s32.totalorder %s630_s14, %s630_s14 }
   0x6   :  { %p637_p3 = por %p636_p2, %p635_p1 }
   0x8   :  { %p638_p4 = pnand %p637_p3, %p631_p0 }
   0xa   :  { %641 = shalt.err (!%p638_p4)
}
   0xb   :  { %s667_s15 = smov 64   ;;  %s668_s16 = smov 4  }
   0xc   :  { %21 = dma.hbm_to_vmem [thread:$0]  %s795_s0, 1024, %s16_s13, [#allocation4], %s667_s15, %s667_s15, %s668_s16  }
   0xd   :  { %662 = dma.done.wait [#allocation4], 1024  }
   0xe   :  { %663 = vsyncadd [#allocation4], 4294966272  ;;  %v669_v0 = vmov 0   ;;  %v112_v1 = vld [vmem:[%s796_s1 + $0x78] sm:$0xff]  ;;  %v111_v2 = vld [vmem:[%s796_s1 + $0x70] sm:$0xff] }
   0xf   :  { %621 = vset.pattern.permute.xlu1 %v669_v0  ;;  %620 = vset.pattern.permute.xlu0 %v669_v0  ;;  %v110_v3 = vld [vmem:[%s796_s1 + $0x68] sm:$0xff]  ;;  %v109_v4 = vld [vmem:[%s796_s1 + $0x60] sm:$0xff]  ;;  %v108_v5 = vld [vmem:[%s796_s1 + $0x58] sm:$0xff] }
  0x10   :  { %525 = vmatprep.subr.mxu0 %v112_v1  ;;  %581 = vmatprep.subr.mxu1 %v112_v1  ;;  %v107_v6 = vld [vmem:[%s796_s1 + $0x50] sm:$0xff]  ;;  %v106_v7 = vld [vmem:[%s796_s1 + $0x48] sm:$0xff]  ;;  %v105_v8 = vld [vmem:[%s796_s1 + $0x40] sm:$0xff] }
  0x11   :  { %526 = vmatpush3.msra.mxu0 %v112_v1  ;;  %597 = vmatpush3.msra.mxu1 %v112_v1  ;;  %v104_v9 = vld [vmem:[%s796_s1 + $0x38] sm:$0xff]  ;;  %v103_v10 = vld [vmem:[%s796_s1 + $0x30] sm:$0xff]  ;;  %v102_v11 = vld [vmem:[%s796_s1 + $0x28] sm:$0xff] }
  0x12   :  { %527 = vmatprep.subr.mxu0 %v111_v2  ;;  %582 = vmatprep.subr.mxu1 %v111_v2  ;;  %v101_v12 = vld [vmem:[%s796_s1 + $0x20] sm:$0xff]  ;;  %v100_v13 = vld [vmem:[%s796_s1 + $0x18] sm:$0xff]  ;;  %v99_v14 = vld [vmem:[%s796_s1 + $0x10] sm:$0xff] }
  0x13   :  { %528 = vmatpush3.msra.mxu0 %v111_v2  ;;  %598 = vmatpush3.msra.mxu1 %v111_v2  ;;  %v98_v15 = vld [vmem:[%s796_s1 + $0x8] sm:$0xff]  ;;  %v455_v16 = vld [vmem:[#allocation3] sm:$0xff]   ;;  %v487_v27 = vld [vmem:[#allocation3 + $0x10] sm:$0xff]  }
  0x14   :  { %529 = vmatprep.subr.mxu0 %v110_v3  ;;  %583 = vmatprep.subr.mxu1 %v110_v3  ;;  %v489_v17 = vld [vmem:[#allocation3 + $0x20] sm:$0xff]   ;;  %v486_v19 = vld [vmem:[#allocation3 + $0x8] sm:$0xff]   ;;  %v456_v21 = vunpack.c.l.bf16 %v455_v16  ;;  %v457_v23 = vunpack.c.h.bf16 %v455_v16  ;;  %v491_v28 = vld [vmem:[#allocation3 + $0x30] sm:$0xff]   ;;  %v464_v33 = vunpack.c.l.bf16 %v487_v27  ;;  %v465_v39 = vunpack.c.h.bf16 %v487_v27 }
  0x15   :  { %530 = vmatpush3.msra.mxu0 %v110_v3  ;;  %599 = vmatpush3.msra.mxu1 %v110_v3  ;;  %v97_v18 = vld [vmem:[%s796_s1] sm:$0xff]  ;;  %v490_v20 = vld [vmem:[#allocation3 + $0x28] sm:$0xff]   ;;  %v472_v22 = vunpack.c.l.bf16 %v489_v17  ;;  %v473_v24 = vunpack.c.h.bf16 %v489_v17  ;;  %v460_v25 = vunpack.c.l.bf16 %v486_v19  ;;  %v311_v29 = vld [vmem:[%s797_s2 + $0x10] sm:$0xff]  ;;  %v461_v31 = vunpack.c.h.bf16 %v486_v19 }
  0x16   :  { %531 = vmatprep.subr.mxu0 %v109_v4  ;;  %584 = vmatprep.subr.mxu1 %v109_v4  ;;  %v476_v26 = vunpack.c.l.bf16 %v490_v20  ;;  %v309_v30 = vld [vmem:[%s797_s2] sm:$0xff]  ;;  %v477_v32 = vunpack.c.h.bf16 %v490_v20  ;;  %v480_v34 = vunpack.c.l.bf16 %v491_v28  ;;  %v488_v35 = vld [vmem:[#allocation3 + $0x18] sm:$0xff]   ;;  %v310_v38 = vld [vmem:[%s797_s2 + $0x8] sm:$0xff]  ;;  %v481_v40 = vunpack.c.h.bf16 %v491_v28 }
  0x17   :  { %532 = vmatpush3.msra.mxu0 %v109_v4  ;;  %600 = vmatpush3.msra.mxu1 %v109_v4  ;;  %v492_v36 = vld [vmem:[#allocation3 + $0x38] sm:$0xff]   ;;  %v468_v41 = vunpack.c.l.bf16 %v488_v35  ;;  %v314_v43 = vld [vmem:[%s797_s2 + $0x28] sm:$0xff]  ;;  %v313_v44 = vld [vmem:[%s797_s2 + $0x20] sm:$0xff]  ;;  %v469_v45 = vunpack.c.h.bf16 %v488_v35 }
  0x18   :  { %533 = vmatprep.subr.mxu0 %v108_v5  ;;  %585 = vmatprep.subr.mxu1 %v108_v5  ;;  %v312_v37 = vld [vmem:[%s797_s2 + $0x18] sm:$0xff]  ;;  %v484_v42 = vunpack.c.l.bf16 %v492_v36  ;;  %v485_v46 = vunpack.c.h.bf16 %v492_v36  ;;  %v315_v48 = vld [vmem:[%s797_s2 + $0x30] sm:$0xff]  ;;  %v318_v49 = vld [vmem:[%s797_s2 + $0x48] sm:$0xff] }
  0x19   :  { %534 = vmatpush3.msra.mxu0 %v108_v5  ;;  %601 = vmatpush3.msra.mxu1 %v108_v5  ;;  %v316_v47 = vld [vmem:[%s797_s2 + $0x38] sm:$0xff]  ;;  %v317_v50 = vld [vmem:[%s797_s2 + $0x40] sm:$0xff]  ;;  %v319_v52 = vld [vmem:[%s797_s2 + $0x50] sm:$0xff] }
  0x1a   :  { %535 = vmatprep.subr.mxu0 %v107_v6  ;;  %586 = vmatprep.subr.mxu1 %v107_v6  ;;  %v320_v51 = vld [vmem:[%s797_s2 + $0x58] sm:$0xff]  ;;  %v322_v53 = vld [vmem:[%s797_s2 + $0x68] sm:$0xff]  ;;  %v321_v54 = vld [vmem:[%s797_s2 + $0x60] sm:$0xff] }
  0x1b   :  { %536 = vmatpush3.msra.mxu0 %v107_v6  ;;  %602 = vmatpush3.msra.mxu1 %v107_v6  ;;  %v324_v55 = vld [vmem:[%s797_s2 + $0x78] sm:$0xff]  ;;  %v323_v56 = vld [vmem:[%s797_s2 + $0x70] sm:$0xff]  ;;  %s670_s2 = smov [#allocation6]  }
  0x1c   :  { %537 = vmatprep.subr.mxu0 %v106_v7  ;;  %587 = vmatprep.subr.mxu1 %v106_v7  ;;  %s442_s0 = sshll.u32 %s670_s2, 4  ;;  %s443_s0 = int_to_ptr.vmem [resolvable:$true] %s442_s0 }
  0x1d   :  { %538 = vmatpush3.msra.mxu0 %v106_v7  ;;  %603 = vmatpush3.msra.mxu1 %v106_v7  ;;  %s642_s25 = scalar_lea.vmem %s443_s0, 2048  ;;  %p647_p6 = scmp.lt.s32.totalorder %s443_s0, %s443_s0 }
  0x1e   :  { %539 = vmatprep.subr.mxu0 %v105_v8  ;;  %588 = vmatprep.subr.mxu1 %v105_v8  ;;  %p643_p5 = scmp.ne.s32.totalorder %s443_s0, %s642_s25  ;;  %p648_p7 = scmp.lt.s32.totalorder %s642_s25, %s642_s25 }
  0x1f   :  { %540 = vmatpush3.msra.mxu0 %v105_v8  ;;  %604 = vmatpush3.msra.mxu1 %v105_v8 }
  0x20   :  { %541 = vmatprep.subr.mxu0 %v104_v9  ;;  %589 = vmatprep.subr.mxu1 %v104_v9  ;;  %p649_p8 = por %p648_p7, %p647_p6 }
  0x21   :  { %542 = vmatpush3.msra.mxu0 %v104_v9  ;;  %605 = vmatpush3.msra.mxu1 %v104_v9 }
  0x22   :  { %543 = vmatprep.subr.mxu0 %v103_v10  ;;  %590 = vmatprep.subr.mxu1 %v103_v10  ;;  %p650_p9 = pnand %p649_p8, %p643_p5 }
  0x23   :  { %544 = vmatpush3.msra.mxu0 %v103_v10  ;;  %606 = vmatpush3.msra.mxu1 %v103_v10 }
  0x24   :  { %545 = vmatprep.subr.mxu0 %v102_v11  ;;  %591 = vmatprep.subr.mxu1 %v102_v11 }
  0x25   :  { %546 = vmatpush3.msra.mxu0 %v102_v11  ;;  %607 = vmatpush3.msra.mxu1 %v102_v11 }
  0x26   :  { %547 = vmatprep.subr.mxu0 %v101_v12  ;;  %592 = vmatprep.subr.mxu1 %v101_v12 }
  0x27   :  { %548 = vmatpush3.msra.mxu0 %v101_v12  ;;  %608 = vmatpush3.msra.mxu1 %v101_v12 }
  0x28   :  { %549 = vmatprep.subr.mxu0 %v100_v13  ;;  %593 = vmatprep.subr.mxu1 %v100_v13 }
  0x29   :  { %550 = vmatpush3.msra.mxu0 %v100_v13  ;;  %609 = vmatpush3.msra.mxu1 %v100_v13 }
  0x2a   :  { %551 = vmatprep.subr.mxu0 %v99_v14  ;;  %594 = vmatprep.subr.mxu1 %v99_v14 }
  0x2b   :  { %552 = vmatpush3.msra.mxu0 %v99_v14  ;;  %610 = vmatpush3.msra.mxu1 %v99_v14 }
  0x2c   :  { %553 = vmatprep.subr.mxu0 %v98_v15  ;;  %595 = vmatprep.subr.mxu1 %v98_v15 }
  0x2d   :  { %554 = vmatpush3.msra.mxu0 %v98_v15  ;;  %611 = vmatpush3.msra.mxu1 %v98_v15 }
  0x2e   :  { %555 = vmatprep.subr.mxu0 %v97_v18  ;;  %596 = vmatprep.subr.mxu1 %v97_v18 }
  0x2f   :  { %556 = vmatpush3.msra.mxu0 %v97_v18  ;;  %612 = vmatpush3.msra.mxu1 %v97_v18 }
  0x30   :  { %557 = vmatprep.mubr.f32.mxu0 %v456_v21  ;;  %569 = vmatprep.mubr.f32.mxu1 %v472_v22 }
  0x31   :  { %558 = vmatmul.mubr.f32.vlgmr.msra.gmra.mxu0 %v457_v23  ;;  %570 = vmatmul.mubr.f32.vlgmr.msra.gmra.mxu1 %v473_v24 }
  0x32   :  { %560 = vmatprep.mubr.f32.mxu0 %v460_v25  ;;  %572 = vmatprep.mubr.f32.mxu1 %v476_v26 }
  0x33   :  { %337 = vperm.xlu1 %621, %v311_v29   ;;  %327 = vperm.xlu0 %620, %v309_v30  }
  0x35   :  { %561 = vmatmul.mubr.f32.gmra.mxu0 %v461_v31  ;;  %573 = vmatmul.mubr.f32.gmra.mxu1 %v477_v32 }
  0x36   :  { %563 = vmatprep.mubr.f32.mxu0 %v464_v33  ;;  %575 = vmatprep.mubr.f32.mxu1 %v480_v34 }
  0x37   :  { %342 = vperm.xlu1 %621, %v312_v37   ;;  %332 = vperm.xlu0 %620, %v310_v38  }
  0x39   :  { %564 = vmatmul.mubr.f32.gmra.mxu0 %v465_v39  ;;  %576 = vmatmul.mubr.f32.gmra.mxu1 %v481_v40 }
  0x3a   :  { %566 = vmatprep.mubr.f32.mxu0 %v468_v41  ;;  %578 = vmatprep.mubr.f32.mxu1 %v484_v42 }
  0x3b   :  { %352 = vperm.xlu1 %621, %v314_v43   ;;  %347 = vperm.xlu0 %620, %v313_v44  }
  0x3d   :  { %567 = vmatmul.mubr.f32.gmra.mxu0 %v469_v45  ;;  %579 = vmatmul.mubr.f32.gmra.mxu1 %v485_v46 }
  0x3f   :  { %362 = vperm.xlu1 %621, %v316_v47   ;;  %357 = vperm.xlu0 %620, %v315_v48  }
  0x43   :  { %372 = vperm.xlu1 %621, %v318_v49   ;;  %367 = vperm.xlu0 %620, %v317_v50  }
  0x47   :  { %382 = vperm.xlu1 %621, %v320_v51   ;;  %377 = vperm.xlu0 %620, %v319_v52  }
  0x4b   :  { %392 = vperm.xlu1 %621, %v322_v53   ;;  %387 = vperm.xlu0 %620, %v321_v54  }
  0x4f   :  { %402 = vperm.xlu1 %621, %v324_v55   ;;  %397 = vperm.xlu0 %620, %v323_v56  }
  0xae   :  { %v338_v57 = vpop.permute.xlu1 %337  ;;  %v328_v58 = vpop.permute.xlu0 %327 }
  0xb2   :  { %v343_v59 = vpop.permute.xlu1 %342  ;;  %v333_v60 = vpop.permute.xlu0 %332 }
  0xb6   :  { %v353_v61 = vpop.permute.xlu1 %352  ;;  %v348_v62 = vpop.permute.xlu0 %347 }
  0xba   :  { %v363_v63 = vpop.permute.xlu1 %362  ;;  %v358_v0 = vpop.permute.xlu0 %357 }
  0xbe   :  { %v373_v1 = vpop.permute.xlu1 %372  ;;  %v368_v2 = vpop.permute.xlu0 %367 }
  0xc2   :  { %v383_v3 = vpop.permute.xlu1 %382  ;;  %v378_v6 = vpop.permute.xlu0 %377 }
  0xc6   :  { %v393_v15 = vpop.permute.xlu1 %392  ;;  %v388_v20 = vpop.permute.xlu0 %387 }
  0xca   :  { %v403_v29 = vpop.permute.xlu1 %402  ;;  %v398_v34 = vpop.permute.xlu0 %397 }
  0xf1   :  { %v559_v4 = vpop.f32.mrf.mxu0  ;;  %v571_v5 = vpop.f32.mrf.mxu1 }
  0xf2   :  { %v406_v7 = vmul.f32 %v559_v4, %v333_v60  ;;  %v414_v8 = vmul.f32 %v571_v5, %v373_v1 }
  0xf3   :  { %v179_v9 = vpop.f32.mrf.mxu0  ;;  %v219_v10 = vpop.f32.mrf.mxu1 }
  0xf4   :  { %422 = vst [vmem:[#allocation6 + $0x8] sm:$0xff] %v406_v7  ;;  %430 = vst [vmem:[#allocation6 + $0x48] sm:$0xff] %v414_v8  ;;  %v405_v11 = vmul.f32 %v328_v58, %v179_v9  ;;  %v413_v12 = vmul.f32 %v368_v2, %v219_v10 }
  0xf5   :  { %v562_v13 = vpop.f32.mrf.mxu0  ;;  %v574_v14 = vpop.f32.mrf.mxu1 }
  0xf6   :  { %421 = vst [vmem:[#allocation6] sm:$0xff] %v405_v11  ;;  %429 = vst [vmem:[#allocation6 + $0x40] sm:$0xff] %v413_v12  ;;  %v408_v16 = vmul.f32 %v562_v13, %v343_v59  ;;  %v416_v17 = vmul.f32 %v574_v14, %v383_v3 }
  0xf7   :  { %v189_v18 = vpop.f32.mrf.mxu0  ;;  %v229_v19 = vpop.f32.mrf.mxu1 }
  0xf8   :  { %424 = vst [vmem:[#allocation6 + $0x18] sm:$0xff] %v408_v16  ;;  %432 = vst [vmem:[#allocation6 + $0x58] sm:$0xff] %v416_v17  ;;  %v407_v21 = vmul.f32 %v338_v57, %v189_v18  ;;  %v415_v22 = vmul.f32 %v378_v6, %v229_v19 }
  0xf9   :  { %v565_v23 = vpop.f32.mrf.mxu0  ;;  %v577_v24 = vpop.f32.mrf.mxu1 }
  0xfa   :  { %423 = vst [vmem:[#allocation6 + $0x10] sm:$0xff] %v407_v21  ;;  %431 = vst [vmem:[#allocation6 + $0x50] sm:$0xff] %v415_v22  ;;  %v410_v25 = vmul.f32 %v565_v23, %v353_v61  ;;  %v418_v26 = vmul.f32 %v577_v24, %v393_v15 }
  0xfb   :  { %v199_v27 = vpop.f32.mrf.mxu0  ;;  %v239_v28 = vpop.f32.mrf.mxu1 }
  0xfc   :  { %426 = vst [vmem:[#allocation6 + $0x28] sm:$0xff] %v410_v25  ;;  %434 = vst [vmem:[#allocation6 + $0x68] sm:$0xff] %v418_v26  ;;  %v409_v30 = vmul.f32 %v348_v62, %v199_v27  ;;  %v417_v31 = vmul.f32 %v388_v20, %v239_v28 }
  0xfd   :  { %v568_v32 = vpop.f32.mrf.mxu0  ;;  %v580_v33 = vpop.f32.mrf.mxu1 }
  0xfe   :  { %425 = vst [vmem:[#allocation6 + $0x20] sm:$0xff] %v409_v30  ;;  %433 = vst [vmem:[#allocation6 + $0x60] sm:$0xff] %v417_v31  ;;  %v412_v35 = vmul.f32 %v568_v32, %v363_v63  ;;  %v420_v36 = vmul.f32 %v580_v33, %v403_v29 }
  0xff   :  { %v209_v37 = vpop.f32.mrf.mxu0  ;;  %v249_v38 = vpop.f32.mrf.mxu1 }
 0x100   :  { %428 = vst [vmem:[#allocation6 + $0x38] sm:$0xff] %v412_v35  ;;  %436 = vst [vmem:[#allocation6 + $0x78] sm:$0xff] %v420_v36  ;;  %v411_v39 = vmul.f32 %v358_v0, %v209_v37  ;;  %v419_v40 = vmul.f32 %v398_v34, %v249_v38 }
 0x102   :  { %427 = vst [vmem:[#allocation6 + $0x30] sm:$0xff] %v411_v39  ;;  %435 = vst [vmem:[#allocation6 + $0x70] sm:$0xff] %v419_v40 }
 0x103   :  { %653 = shalt.err (!%p650_p9)
}
 0x104   :  { %s671_s26 = smov 128   ;;  %s672_s27 = smov 8  }
 0x105   :  { %448 = dma.vmem_to_hbm [thread:$0]  %s443_s0, 2048, %s798_s3, [#allocation5], %s671_s26, %s671_s26, %s672_s27  }
 0x106   :  { %664 = dma.done.wait [#allocation5], 2048  }
 0x107   :  { %665 = vsyncadd [#allocation5], 4294965248 }
 0x108   :  { %452 = vsyncpa [#allocation4], 1 }
 0x109   :  { %453 = vsyncpa [#allocation5], 1 }

</bundles_post_ra>
